<compile_context>
chip_gen: v7x
topology: tpu7x:2x2x1
jax: 0.10.0
libtpu: 0.0.40
codegen_flags: <defaults>
</compile_context>

<pallas_src>
import functools

import jax
import jax.numpy as jnp
from jax.experimental import pallas as pl
from jax.experimental.pallas import tpu as pltpu


# --------------------------------------------------------------------------- #
# Kernel
# --------------------------------------------------------------------------- #
def _dino_loss_kernel(inv_ttemp_ref, student_ref, teacher_ref, center_ref,
                      bc_ref, loss_ref, q_ref, *,
                      inv_student_temp, use_mxu_reductions):
    """One (row_tile, crop) grid step of the DINO loss.

    inv_ttemp_ref : SMEM (1,) f32, 1 / teacher_temp_factor
    student_ref   : (1, TB, D)  current crop's rows of this tile
    teacher_ref   : (2, TB, D)  both teacher crops' rows of this tile
    center_ref    : (1, D)
    bc_ref        : (1, 1, D)   per-tile teacher row-sum (written at crop==0)
    loss_ref      : (1, 1, 128) per-tile CE partial (accumulated over crops)
    q_ref         : VMEM scratch (2, TB, D) f32, teacher softmax cache
    """
    c = pl.program_id(1)          # crop index (inner, "arbitrary" axis)
    d = student_ref.shape[-1]

    if use_mxu_reductions:
        ones_col = jnp.ones((d, 1), dtype=jnp.float32)

        def row_sum(x):           # lane reduction on the MXU (frees VPU slots)
            return jnp.dot(x, ones_col, preferred_element_type=jnp.float32)
    else:
        def row_sum(x):
            return jnp.sum(x, axis=-1, keepdims=True)

    # ---- per-tile work: teacher softmax + batch_center partial (crop 0 only)
    @pl.when(c == 0)
    def _teacher():
        center = center_ref[...].astype(jnp.float32)            # (1, D)
        inv_ttemp = inv_ttemp_ref[0]
        t0 = teacher_ref[0].astype(jnp.float32)                  # (TB, D)
        t1 = teacher_ref[1].astype(jnp.float32)                  # (TB, D)

        def _softmax(logits):
            m = jnp.max(logits, axis=-1, keepdims=True)
            e = jnp.exp(logits - m)
            denom = row_sum(e)                                   # (TB, 1)
            # exact reciprocal: denom is only (TB,1), accuracy matters more
            return e * pl.reciprocal(denom, approx=False)

        q_ref[0] = _softmax((t0 - center) * inv_ttemp)
        q_ref[1] = _softmax((t1 - center) * inv_ttemp)

        bc_ref[0] = (jnp.sum(t0, axis=0, keepdims=True)
                     + jnp.sum(t1, axis=0, keepdims=True))       # (1, D)

    # ---- student log-softmax for the current crop (every step) ----
    s = student_ref[0].astype(jnp.float32) * inv_student_temp    # (TB, D)
    m = jnp.max(s, axis=-1, keepdims=True)
    shifted = s - m
    lse = jnp.log(row_sum(jnp.exp(shifted)))                     # (TB, 1)
    lp = shifted - lse                                           # log_softmax

    q0 = q_ref[0]
    q1 = q_ref[1]

    # Crop/teacher pairing (v == iq skipped in the reference):
    #   crop 0 -> teacher 1 only, crop 1 -> teacher 0 only, crops >=2 -> both.
    @pl.when(c == 0)
    def _crop0():   # also initializes the per-tile loss partial
        ce = jnp.sum(row_sum(q1 * lp))
        loss_ref[...] = jnp.full(loss_ref.shape, -ce, dtype=jnp.float32)

    @pl.when(c == 1)
    def _crop1():
        loss_ref[...] += -jnp.sum(row_sum(q0 * lp))

    @pl.when(c >= 2)
    def _crop_hi():  # (q0 + q1) inline; q_sum is never materialized
        loss_ref[...] += -jnp.sum(row_sum((q0 + q1) * lp))


# --------------------------------------------------------------------------- #
# Per-generation sizing helpers
# --------------------------------------------------------------------------- #
def _tpu_vmem_and_gen():
    """Return (per-step VMEM budget, physical VMEM bytes, is_v7x)."""
    phys = None
    try:
        info = pltpu.get_tpu_info()
        cap = getattr(info, "vmem_capacity_bytes", None)
        if cap:
            phys = int(cap)
    except Exception:
        phys = None

    kind = ""
    try:
        kind = jax.devices()[0].device_kind.lower().replace(" ", "")
    except Exception:
        pass
    is_v7x = ("v7" in kind) or ("tpu7" in kind)

    if phys is None:
        phys = 64 * 1024 * 1024 if is_v7x else 128 * 1024 * 1024

    # Leave headroom for compiler-internal scratch / pipeline bookkeeping.
    budget = 48 * 1024 * 1024 if phys <= 64 * 1024 * 1024 else 100 * 1024 * 1024
    return budget, phys, is_v7x


def _step_vmem_bytes(row_tile, d, in_bytes):
    """Conservative per-step VMEM footprint (double-buffered inputs + temps)."""
    inputs = (2 * 1 + 2 * 2) * row_tile * d * in_bytes   # student + teacher, x2 buf
    scratch = 2 * row_tile * d * 4                       # persistent q cache
    temps = 4 * row_tile * d * 4                         # f32 exp/log-softmax temps
    small = 4 * d * 4 + 64 * 1024                        # center, outputs, misc
    return inputs + scratch + temps + small


def _pick_row_tile(batch, d, in_bytes, budget):
    """Largest TB (multiple of 8, dividing batch) whose footprint fits budget."""
    cands = [t for t in range(8, batch + 1, 8) if batch % t == 0]
    if not cands:
        return batch
    best = None
    for t in cands:
        if _step_vmem_bytes(t, d, in_bytes) <= budget:
            best = t
    return best if best is not None else cands[0]


# --------------------------------------------------------------------------- #
# Wrapper
# --------------------------------------------------------------------------- #
def dino_loss(student_output, teacher_output, center, teacher_temp_factor,
              *, ncrops, student_temp=0.1, row_tile=None,
              use_mxu_reductions=None):
    n_student_rows, d = student_output.shape
    assert n_student_rows % ncrops == 0
    batch = n_student_rows // ncrops
    assert teacher_output.shape == (2 * batch, d)
    assert center.shape[-1] == d
    assert d % 128 == 0, "feature dim must be lane-aligned (multiple of 128)"
    assert batch % 8 == 0, "batch must be a multiple of 8 (f32 sublane tiling)"

    in_bytes = max(jnp.dtype(student_output.dtype).itemsize,
                   jnp.dtype(teacher_output.dtype).itemsize)

    budget, phys_vmem, is_v7x = _tpu_vmem_and_gen()
    if use_mxu_reductions is None:
        use_mxu_reductions = is_v7x        # VALU-bound on v7x; HBM-bound elsewhere

    if row_tile is None:
        row_tile = _pick_row_tile(batch, d, in_bytes, budget)
    assert batch % row_tile == 0 and row_tile % 8 == 0
    num_tiles = batch // row_tile

    need = _step_vmem_bytes(row_tile, d, in_bytes)
    if need > budget:
        raise ValueError(
            f"row_tile={row_tile} needs ~{need >> 20} MiB VMEM, over the "
            f"{budget >> 20} MiB budget for this TPU generation; use a smaller "
            f"row_tile.")
    vmem_limit = int(min(max(need, 32 * 1024 * 1024), phys_vmem))

    # Per-crop leading axes so the grid indexes crops without value slicing.
    student3 = student_output.reshape(ncrops, batch, d)
    teacher3 = teacher_output.reshape(2, batch, d)
    center2 = center.reshape(1, d)

    # One divide in the wrapper instead of one per grid step.
    inv_ttemp = (jnp.float32(1.0)
                 / jnp.asarray(teacher_temp_factor, dtype=jnp.float32)).reshape(1)

    n_terms = sum(1 for iq in range(2) for v in range(ncrops) if v != iq)

    kernel = functools.partial(
        _dino_loss_kernel,
        inv_student_temp=float(1.0 / student_temp),
        use_mxu_reductions=bool(use_mxu_reductions))

    bc_part, loss_part = pl.pallas_call(
        kernel,
        out_shape=(
            jax.ShapeDtypeStruct((num_tiles, 1, d), jnp.float32),    # bc partials
            jax.ShapeDtypeStruct((num_tiles, 1, 128), jnp.float32),  # loss partials
        ),
        grid=(num_tiles, ncrops),
        in_specs=[
            pl.BlockSpec(memory_space=pltpu.MemorySpace.SMEM),            # 1/ttemp
            pl.BlockSpec((1, row_tile, d), lambda i, c: (c, i, 0)),       # student
            pl.BlockSpec((2, row_tile, d), lambda i, c: (0, i, 0)),       # teacher
            pl.BlockSpec((1, d), lambda i, c: (0, 0)),                    # center
        ],
        out_specs=(
            pl.BlockSpec((1, 1, d), lambda i, c: (i, 0, 0)),              # bc_part
            pl.BlockSpec((1, 1, 128), lambda i, c: (i, 0, 0)),            # loss_part
        ),
        scratch_shapes=[pltpu.VMEM((2, row_tile, d), jnp.float32)],       # q cache
        compiler_params=pltpu.CompilerParams(
            dimension_semantics=("parallel", "arbitrary"),
            vmem_limit_bytes=vmem_limit),
    )(inv_ttemp, student3, teacher3, center2)

    # Tiny wrapper-side reductions over the per-tile partials.
    total_loss = jnp.sum(loss_part[:, 0, 0]) / jnp.float32(batch * n_terms)
    batch_center = (jnp.sum(bc_part[:, 0, :], axis=0, keepdims=True)
                    / jnp.float32(2 * batch)).astype(teacher_output.dtype)
    return batch_center, total_loss


# --------------------------------------------------------------------------- #
# Pure-JAX reference (mirrors the PyTorch module)
# --------------------------------------------------------------------------- #
def _dino_loss_ref(student_output, teacher_output, center, teacher_temp_factor,
                   *, ncrops, student_temp=0.1):
    batch = student_output.shape[0] // ncrops
    student_out = student_output / student_temp
    teacher_out = jax.nn.softmax(
        (teacher_output - center) / teacher_temp_factor, axis=-1)
    total = 0.0
    n_terms = 0
    for iq in range(2):
        q = teacher_out[iq * batch:(iq + 1) * batch]
        for v in range(ncrops):
            if v == iq:
                continue
            sv = student_out[v * batch:(v + 1) * batch]
            loss = jnp.sum(-q * jax.nn.log_softmax(sv, axis=-1), axis=-1)
            total = total + jnp.mean(loss)
            n_terms += 1
    total = total / n_terms
    batch_center = jnp.mean(teacher_output, axis=0, keepdims=True)
    return batch_center, total


if __name__ == "__main__":
    ncrops = 4
    batch = 16          # multiple of 8 (sublane aligned)
    dim = 128           # multiple of 128 (lane aligned)
    teacher_temp_factor = 0.04

    key = jax.random.PRNGKey(0)
    k1, k2, k3 = jax.random.split(key, 3)
    student_output = jax.random.normal(k1, (ncrops * batch, dim), dtype=jnp.float32)
    teacher_output = jax.random.normal(k2, (2 * batch, dim), dtype=jnp.float32)
    center = jax.random.normal(k3, (1, dim), dtype=jnp.float32) * 0.1

    bc_ref, loss_ref = _dino_loss_ref(
        student_output, teacher_output, center, teacher_temp_factor, ncrops=ncrops)

    # (a) explicit row_tile=8 -> grid (2, 4): exercises multiple row tiles,
    #     the persistent teacher-softmax scratch and per-tile partial outputs.
    bc_a, loss_a = dino_loss(
        student_output, teacher_output, center, teacher_temp_factor,
        ncrops=ncrops, row_tile=8)
    jax.block_until_ready((bc_a, loss_a))

    # (b) auto-sized row_tile (per-generation VMEM budget) -> grid (1, 4).
    bc_b, loss_b = dino_loss(
        student_output, teacher_output, center, teacher_temp_factor,
        ncrops=ncrops)
    jax.block_until_ready((bc_b, loss_b))

    for bc, loss in ((bc_a, loss_a), (bc_b, loss_b)):
        assert jnp.allclose(bc, bc_ref, atol=1e-5, rtol=1e-5)
        # Exact reciprocal in the teacher softmax -> tight tolerance restored.
        assert jnp.allclose(loss, loss_ref, atol=1e-4, rtol=1e-4)

    print("KERNEL_OK")
</pallas_src>

<mosaic_0001>
module attributes {stable_mosaic.version = 11 : i64} {
  func.func @_dino_loss_kernel(%arg0: i32, %arg1: i32, %arg2: memref<1xf32, #tpu.memory_space<smem>>, %arg3: memref<1x8x128xf32, #tpu.memory_space<vmem>>, %arg4: memref<2x8x128xf32, #tpu.memory_space<vmem>>, %arg5: memref<1x128xf32, #tpu.memory_space<vmem>>, %arg6: memref<1x1x128xf32, #tpu.memory_space<vmem>>, %arg7: memref<1x1x128xf32, #tpu.memory_space<vmem>>, %arg8: memref<2x8x128xf32, #tpu.memory_space<vmem>>) attributes {dimension_semantics = [#tpu.dimension_semantics<parallel>, #tpu.dimension_semantics<arbitrary>], iteration_bounds = array<i64: 2, 4>, scalar_prefetch = 0 : i64, scratch_operands = 1 : i64, tpu.core_type = #tpu.core_type<tc>, window_params = [{transform_indices = @transform_0, window_bounds = array<i64: 1>}, {transform_indices = @transform_1, window_bounds = array<i64: 1, 8, 128>}, {transform_indices = @transform_2, window_bounds = array<i64: 2, 8, 128>}, {pipeline_mode = #tpu.pipeline_mode<synchronous>, transform_indices = @transform_3, window_bounds = array<i64: 1, 128>}, {transform_indices = @transform_4, window_bounds = array<i64: 1, 1, 128>}, {transform_indices = @transform_5, window_bounds = array<i64: 1, 1, 128>}]} {
    %c0_i32 = arith.constant 0 : i32
    %0 = arith.cmpi eq, %arg1, %c0_i32 : i32
    %1 = arith.extui %0 : i1 to i32
    %c0_i32_0 = arith.constant 0 : i32
    %2 = arith.cmpi ne, %1, %c0_i32_0 : i32
    scf.if %2 {
      %c0_14 = arith.constant 0 : index
      %c0_15 = arith.constant 0 : index
      %30 = vector.load %arg5[%c0_14, %c0_15] : memref<1x128xf32, #tpu.memory_space<vmem>>, vector<1x128xf32>
      %c0_16 = arith.constant 0 : index
      %31 = memref.load %arg2[%c0_16] : memref<1xf32, #tpu.memory_space<smem>>
      %c0_17 = arith.constant 0 : index
      %c0_18 = arith.constant 0 : index
      %c0_19 = arith.constant 0 : index
      %32 = vector.load %arg4[%c0_17, %c0_18, %c0_19] : memref<2x8x128xf32, #tpu.memory_space<vmem>>, vector<1x8x128xf32>
      %33 = vector.shape_cast %32 : vector<1x8x128xf32> to vector<8x128xf32>
      %c1_20 = arith.constant 1 : index
      %c0_21 = arith.constant 0 : index
      %c0_22 = arith.constant 0 : index
      %34 = vector.load %arg4[%c1_20, %c0_21, %c0_22] : memref<2x8x128xf32, #tpu.memory_space<vmem>>, vector<1x8x128xf32>
      %35 = vector.shape_cast %34 : vector<1x8x128xf32> to vector<8x128xf32>
      %36 = vector.broadcast %30 : vector<1x128xf32> to vector<8x128xf32>
      %37 = arith.subf %33, %36 : vector<8x128xf32>
      %38 = vector.broadcast %31 : f32 to vector<8x128xf32>
      %39 = arith.mulf %37, %38 : vector<8x128xf32>
      %cst_23 = arith.constant dense<0xFF800000> : vector<8xf32>
      %40 = vector.multi_reduction <maximumf>, %39, %cst_23 [1] : vector<8x128xf32> to vector<8xf32>
      %41 = vector.shape_cast %40 : vector<8xf32> to vector<8x1xf32>
      %42 = vector.broadcast %41 : vector<8x1xf32> to vector<8x128xf32>
      %43 = arith.subf %39, %42 : vector<8x128xf32>
      %44 = math.exp %43 : vector<8x128xf32>
      %cst_24 = arith.constant dense<0.000000e+00> : vector<8xf32>
      %45 = vector.multi_reduction <add>, %44, %cst_24 [1] : vector<8x128xf32> to vector<8xf32>
      %46 = vector.shape_cast %45 : vector<8xf32> to vector<8x1xf32>
      %47 = tpu.reciprocal %46 : vector<8x1xf32> -> vector<8x1xf32>
      %48 = vector.broadcast %47 : vector<8x1xf32> to vector<8x128xf32>
      %49 = arith.mulf %44, %48 : vector<8x128xf32>
      %c0_25 = arith.constant 0 : index
      %c0_26 = arith.constant 0 : index
      %c0_27 = arith.constant 0 : index
      %50 = vector.load %arg8[%c0_25, %c0_26, %c0_27] : memref<2x8x128xf32, #tpu.memory_space<vmem>>, vector<1x8x128xf32>
      %51 = vector.shape_cast %50 : vector<1x8x128xf32> to vector<8x128xf32>
      %52 = vector.shape_cast %49 : vector<8x128xf32> to vector<1x8x128xf32>
      tpu.vector_store %arg8[%c0_25, %c0_26, %c0_27], %52 {strides = array<i32>} : memref<2x8x128xf32, #tpu.memory_space<vmem>>, vector<1x8x128xf32>,
      %53 = vector.broadcast %30 : vector<1x128xf32> to vector<8x128xf32>
      %54 = arith.subf %35, %53 : vector<8x128xf32>
      %55 = vector.broadcast %31 : f32 to vector<8x128xf32>
      %56 = arith.mulf %54, %55 : vector<8x128xf32>
      %cst_28 = arith.constant dense<0xFF800000> : vector<8xf32>
      %57 = vector.multi_reduction <maximumf>, %56, %cst_28 [1] : vector<8x128xf32> to vector<8xf32>
      %58 = vector.shape_cast %57 : vector<8xf32> to vector<8x1xf32>
      %59 = vector.broadcast %58 : vector<8x1xf32> to vector<8x128xf32>
      %60 = arith.subf %56, %59 : vector<8x128xf32>
      %61 = math.exp %60 : vector<8x128xf32>
      %cst_29 = arith.constant dense<0.000000e+00> : vector<8xf32>
      %62 = vector.multi_reduction <add>, %61, %cst_29 [1] : vector<8x128xf32> to vector<8xf32>
      %63 = vector.shape_cast %62 : vector<8xf32> to vector<8x1xf32>
      %64 = tpu.reciprocal %63 : vector<8x1xf32> -> vector<8x1xf32>
      %65 = vector.broadcast %64 : vector<8x1xf32> to vector<8x128xf32>
      %66 = arith.mulf %61, %65 : vector<8x128xf32>
      %c1_30 = arith.constant 1 : index
      %c0_31 = arith.constant 0 : index
      %c0_32 = arith.constant 0 : index
      %67 = vector.load %arg8[%c1_30, %c0_31, %c0_32] : memref<2x8x128xf32, #tpu.memory_space<vmem>>, vector<1x8x128xf32>
      %68 = vector.shape_cast %67 : vector<1x8x128xf32> to vector<8x128xf32>
      %69 = vector.shape_cast %66 : vector<8x128xf32> to vector<1x8x128xf32>
      tpu.vector_store %arg8[%c1_30, %c0_31, %c0_32], %69 {strides = array<i32>} : memref<2x8x128xf32, #tpu.memory_space<vmem>>, vector<1x8x128xf32>,
      %cst_33 = arith.constant dense<0.000000e+00> : vector<128xf32>
      %70 = vector.multi_reduction <add>, %33, %cst_33 [0] : vector<8x128xf32> to vector<128xf32>
      %71 = vector.shape_cast %70 : vector<128xf32> to vector<1x128xf32>
      %cst_34 = arith.constant dense<0.000000e+00> : vector<128xf32>
      %72 = vector.multi_reduction <add>, %35, %cst_34 [0] : vector<8x128xf32> to vector<128xf32>
      %73 = vector.shape_cast %72 : vector<128xf32> to vector<1x128xf32>
      %74 = arith.addf %71, %73 : vector<1x128xf32>
      %c0_35 = arith.constant 0 : index
      %c0_36 = arith.constant 0 : index
      %c0_37 = arith.constant 0 : index
      %75 = vector.load %arg6[%c0_35, %c0_36, %c0_37] : memref<1x1x128xf32, #tpu.memory_space<vmem>>, vector<1x1x128xf32>
      %76 = vector.shape_cast %75 : vector<1x1x128xf32> to vector<1x128xf32>
      %77 = vector.shape_cast %74 : vector<1x128xf32> to vector<1x1x128xf32>
      tpu.vector_store %arg6[%c0_35, %c0_36, %c0_37], %77 {strides = array<i32>} : memref<1x1x128xf32, #tpu.memory_space<vmem>>, vector<1x1x128xf32>,
    } else {
    }
    %c0 = arith.constant 0 : index
    %c0_1 = arith.constant 0 : index
    %c0_2 = arith.constant 0 : index
    %3 = vector.load %arg3[%c0, %c0_1, %c0_2] : memref<1x8x128xf32, #tpu.memory_space<vmem>>, vector<1x8x128xf32>
    %4 = vector.shape_cast %3 : vector<1x8x128xf32> to vector<8x128xf32>
    %cst = arith.constant 1.000000e+01 : f32
    %5 = vector.broadcast %cst : f32 to vector<8x128xf32>
    %6 = arith.mulf %4, %5 : vector<8x128xf32>
    %cst_3 = arith.constant dense<0xFF800000> : vector<8xf32>
    %7 = vector.multi_reduction <maximumf>, %6, %cst_3 [1] : vector<8x128xf32> to vector<8xf32>
    %8 = vector.shape_cast %7 : vector<8xf32> to vector<8x1xf32>
    %9 = vector.broadcast %8 : vector<8x1xf32> to vector<8x128xf32>
    %10 = arith.subf %6, %9 : vector<8x128xf32>
    %11 = math.exp %10 : vector<8x128xf32>
    %cst_4 = arith.constant dense<0.000000e+00> : vector<8xf32>
    %12 = vector.multi_reduction <add>, %11, %cst_4 [1] : vector<8x128xf32> to vector<8xf32>
    %13 = vector.shape_cast %12 : vector<8xf32> to vector<8x1xf32>
    %14 = math.log %13 : vector<8x1xf32>
    %15 = vector.broadcast %14 : vector<8x1xf32> to vector<8x128xf32>
    %16 = arith.subf %10, %15 : vector<8x128xf32>
    %c0_5 = arith.constant 0 : index
    %c0_6 = arith.constant 0 : index
    %c0_7 = arith.constant 0 : index
    %17 = vector.load %arg8[%c0_5, %c0_6, %c0_7] : memref<2x8x128xf32, #tpu.memory_space<vmem>>, vector<1x8x128xf32>
    %18 = vector.shape_cast %17 : vector<1x8x128xf32> to vector<8x128xf32>
    %c1 = arith.constant 1 : index
    %c0_8 = arith.constant 0 : index
    %c0_9 = arith.constant 0 : index
    %19 = vector.load %arg8[%c1, %c0_8, %c0_9] : memref<2x8x128xf32, #tpu.memory_space<vmem>>, vector<1x8x128xf32>
    %20 = vector.shape_cast %19 : vector<1x8x128xf32> to vector<8x128xf32>
    %c0_i32_10 = arith.constant 0 : i32
    %21 = arith.cmpi eq, %arg1, %c0_i32_10 : i32
    %22 = arith.extui %21 : i1 to i32
    %c0_i32_11 = arith.constant 0 : i32
    %23 = arith.cmpi ne, %22, %c0_i32_11 : i32
    scf.if %23 {
      %30 = arith.mulf %20, %16 : vector<8x128xf32>
      %cst_14 = arith.constant dense<0.000000e+00> : vector<8xf32>
      %31 = vector.multi_reduction <add>, %30, %cst_14 [1] : vector<8x128xf32> to vector<8xf32>
      %32 = vector.shape_cast %31 : vector<8xf32> to vector<8x1xf32>
      %33 = vector.shape_cast %32 : vector<8x1xf32> to vector<1x8x1xf32>
      %cst_15 = arith.constant dense<0.000000e+00> : vector<1xf32>
      %34 = vector.multi_reduction <add>, %33, %cst_15 [1, 2] : vector<1x8x1xf32> to vector<1xf32>
      %35 = vector.shape_cast %34 : vector<1xf32> to vector<1x1x1xf32>
      %36 = vector.extract %35[0, 0, 0] : f32 from vector<1x1x1xf32>
      %cst_16 = arith.constant 0.000000e+00 : f32
      %37 = arith.subf %cst_16, %36 : f32
      %38 = vector.broadcast %37 : f32 to vector<1x1x128xf32>
      %c0_17 = arith.constant 0 : index
      %c0_18 = arith.constant 0 : index
      %c0_19 = arith.constant 0 : index
      %39 = vector.load %arg7[%c0_17, %c0_18, %c0_19] : memref<1x1x128xf32, #tpu.memory_space<vmem>>, vector<1x1x128xf32>
      tpu.vector_store %arg7[%c0_17, %c0_18, %c0_19], %38 {strides = array<i32>} : memref<1x1x128xf32, #tpu.memory_space<vmem>>, vector<1x1x128xf32>,
    } else {
    }
    %c1_i32 = arith.constant 1 : i32
    %24 = arith.cmpi eq, %arg1, %c1_i32 : i32
    %25 = arith.extui %24 : i1 to i32
    %c0_i32_12 = arith.constant 0 : i32
    %26 = arith.cmpi ne, %25, %c0_i32_12 : i32
    scf.if %26 {
      %c0_14 = arith.constant 0 : index
      %c0_15 = arith.constant 0 : index
      %c0_16 = arith.constant 0 : index
      %30 = vector.load %arg7[%c0_14, %c0_15, %c0_16] : memref<1x1x128xf32, #tpu.memory_space<vmem>>, vector<1x1x128xf32>
      %31 = arith.mulf %18, %16 : vector<8x128xf32>
      %cst_17 = arith.constant dense<0.000000e+00> : vector<8xf32>
      %32 = vector.multi_reduction <add>, %31, %cst_17 [1] : vector<8x128xf32> to vector<8xf32>
      %33 = vector.shape_cast %32 : vector<8xf32> to vector<8x1xf32>
      %34 = vector.shape_cast %33 : vector<8x1xf32> to vector<1x8x1xf32>
      %cst_18 = arith.constant dense<0.000000e+00> : vector<1xf32>
      %35 = vector.multi_reduction <add>, %34, %cst_18 [1, 2] : vector<1x8x1xf32> to vector<1xf32>
      %36 = vector.shape_cast %35 : vector<1xf32> to vector<1x1x1xf32>
      %37 = vector.extract %36[0, 0, 0] : f32 from vector<1x1x1xf32>
      %cst_19 = arith.constant 0.000000e+00 : f32
      %38 = arith.subf %cst_19, %37 : f32
      %39 = vector.broadcast %38 : f32 to vector<1x1x128xf32>
      %40 = arith.addf %30, %39 : vector<1x1x128xf32>
      %c0_20 = arith.constant 0 : index
      %c0_21 = arith.constant 0 : index
      %c0_22 = arith.constant 0 : index
      %41 = vector.load %arg7[%c0_20, %c0_21, %c0_22] : memref<1x1x128xf32, #tpu.memory_space<vmem>>, vector<1x1x128xf32>
      tpu.vector_store %arg7[%c0_20, %c0_21, %c0_22], %40 {strides = array<i32>} : memref<1x1x128xf32, #tpu.memory_space<vmem>>, vector<1x1x128xf32>,
    } else {
    }
    %c2_i32 = arith.constant 2 : i32
    %27 = arith.cmpi sge, %arg1, %c2_i32 : i32
    %28 = arith.extui %27 : i1 to i32
    %c0_i32_13 = arith.constant 0 : i32
    %29 = arith.cmpi ne, %28, %c0_i32_13 : i32
    scf.if %29 {
      %c0_14 = arith.constant 0 : index
      %c0_15 = arith.constant 0 : index
      %c0_16 = arith.constant 0 : index
      %30 = vector.load %arg7[%c0_14, %c0_15, %c0_16] : memref<1x1x128xf32, #tpu.memory_space<vmem>>, vector<1x1x128xf32>
      %31 = arith.addf %18, %20 : vector<8x128xf32>
      %32 = arith.mulf %31, %16 : vector<8x128xf32>
      %cst_17 = arith.constant dense<0.000000e+00> : vector<8xf32>
      %33 = vector.multi_reduction <add>, %32, %cst_17 [1] : vector<8x128xf32> to vector<8xf32>
      %34 = vector.shape_cast %33 : vector<8xf32> to vector<8x1xf32>
      %35 = vector.shape_cast %34 : vector<8x1xf32> to vector<1x8x1xf32>
      %cst_18 = arith.constant dense<0.000000e+00> : vector<1xf32>
      %36 = vector.multi_reduction <add>, %35, %cst_18 [1, 2] : vector<1x8x1xf32> to vector<1xf32>
      %37 = vector.shape_cast %36 : vector<1xf32> to vector<1x1x1xf32>
      %38 = vector.extract %37[0, 0, 0] : f32 from vector<1x1x1xf32>
      %cst_19 = arith.constant 0.000000e+00 : f32
      %39 = arith.subf %cst_19, %38 : f32
      %40 = vector.broadcast %39 : f32 to vector<1x1x128xf32>
      %41 = arith.addf %30, %40 : vector<1x1x128xf32>
      %c0_20 = arith.constant 0 : index
      %c0_21 = arith.constant 0 : index
      %c0_22 = arith.constant 0 : index
      %42 = vector.load %arg7[%c0_20, %c0_21, %c0_22] : memref<1x1x128xf32, #tpu.memory_space<vmem>>, vector<1x1x128xf32>
      tpu.vector_store %arg7[%c0_20, %c0_21, %c0_22], %41 {strides = array<i32>} : memref<1x1x128xf32, #tpu.memory_space<vmem>>, vector<1x1x128xf32>,
    } else {
    }
    return
  }
  func.func @transform_0(%arg0: i32, %arg1: i32) -> i32 {
    %c0_i32 = arith.constant 0 : i32
    %c0_i32_0 = arith.constant 0 : i32
    return %c0_i32 : i32
  }
  func.func @transform_1(%arg0: i32, %arg1: i32) -> (i32, i32, i32) {
    %c0_i32 = arith.constant 0 : i32
    %c0_i32_0 = arith.constant 0 : i32
    return %arg1, %arg0, %c0_i32 : i32, i32, i32
  }
  func.func @transform_2(%arg0: i32, %arg1: i32) -> (i32, i32, i32) {
    %c0_i32 = arith.constant 0 : i32
    %c0_i32_0 = arith.constant 0 : i32
    %c0_i32_1 = arith.constant 0 : i32
    return %c0_i32, %arg0, %c0_i32_0 : i32, i32, i32
  }
  func.func @transform_3(%arg0: i32, %arg1: i32) -> (i32, i32) {
    %c0_i32 = arith.constant 0 : i32
    %c0_i32_0 = arith.constant 0 : i32
    %c0_i32_1 = arith.constant 0 : i32
    return %c0_i32, %c0_i32_0 : i32, i32
  }
  func.func @transform_4(%arg0: i32, %arg1: i32) -> (i32, i32, i32) {
    %c0_i32 = arith.constant 0 : i32
    %c0_i32_0 = arith.constant 0 : i32
    %c0_i32_1 = arith.constant 0 : i32
    return %arg0, %c0_i32, %c0_i32_0 : i32, i32, i32
  }
  func.func @transform_5(%arg0: i32, %arg1: i32) -> (i32, i32, i32) {
    %c0_i32 = arith.constant 0 : i32
    %c0_i32_0 = arith.constant 0 : i32
    %c0_i32_1 = arith.constant 0 : i32
    return %arg0, %c0_i32, %c0_i32_0 : i32, i32, i32
  }
}

</mosaic_0001>

<bundles_post_ra>
// kernel: tpu_custom_call.1
= control target key start
LH: loop header
LB: loop body
LE: loop exit
PB: predicated region body
PF: predicated region fallthrough
CT: control target
= control target key end

     0   :  { %s1363_s0 = inlined_call_operand.<no memory space> [shape: f32[1], index: 0, kind: input, shape index: {}]   ;;  %s1364_s1 = inlined_call_operand.hbm [shape: f32[4,16,128], index: 1, kind: input, shape index: {}]   ;;  %s1365_s2 = inlined_call_operand.hbm [shape: f32[2,16,128], index: 2, kind: input, shape index: {}]   ;;  %s1366_s3 = inlined_call_operand.vmem [shape: f32[1,128], index: 3, kind: input, shape index: {}]   ;;  %s1367_s4 = inlined_call_operand.hbm [shape: f32[2,1,128], index: 4, kind: output, shape index: {0}]   ;;  %s1368_s5 = inlined_call_operand.hbm [shape: f32[2,1,128], index: 5, kind: output, shape index: {1}]  }
   0x1   :  { %1375 = sst [smem:[#allocation21_spill]] %s1364_s1 }
   0x2   :  { %11 = sst [smem:[#allocation3]] %s1363_s0 }
   0x3   :  { %12 = vsyncpa [#allocation5], 0 }
   0x4   :  { %14 = vsyncpa [#allocation5 + $0x1], 0 }
   0x5   :  { %15 = vsyncpa [#allocation8], 0 }
   0x6   :  { %17 = vsyncpa [#allocation8 + $0x1], 0 }
   0x7   :  { %18 = vsyncpa [#allocation6], 0 }
   0x8   :  { %20 = vsyncpa [#allocation6 + $0x1], 0 }
   0x9   :  { %21 = vsyncpa [#allocation11], 0 }
   0xa   :  { %23 = vsyncpa [#allocation11 + $0x1], 0  ;;  %s1017_s20 = smov 0   ;;  %s1019_s21 = smov 0  }
   0xb   :  { %s1021_s22 = smov 0   ;;  %s1023_s23 = smov 0  }
   0xc   :  { %s1025_s24 = smov 0   ;;  %s1027_s25 = smov 0  }
   0xd   :  { %s1029_s0 = smov 0   ;;  %s1031_s26 = smov 0  }
   0xe   :  { %s1033_s27 = smov 0   ;;  %s1035_s28 = smov 0  }
   0xf   :  { %s1037_s29 = smov 0  }
  0x10 LB: > { %1376 = sst [smem:[#allocation16_spill]] %s955_s25  ;;  %s602_s30 = sadd.s32 4294967295, %s975_s29   ;;  %s975_s29 = sphi %s1037_s29, %s29_s29   ;;  %s971_s28 = sphi %s1035_s28, %s1411_s28   ;;  %s967_s27 = sphi %s1033_s27, %s1410_s27   ;;  %s963_s26 = sphi %s1031_s26, %s1409_s26   ;;  %s959_s0 = sphi %s1029_s0, %s1408_s0   ;;  %s955_s25 = sphi %s1027_s25, %s1400_s25   ;;  %s951_s24 = sphi %s1025_s24, %s1407_s24   ;;  %s947_s23 = sphi %s1023_s23, %s1406_s23   ;;  %s943_s22 = sphi %s1021_s22, %s1405_s22   ;;  %s939_s21 = sphi %s1019_s21, %s1404_s21   ;;  %s935_s20 = sphi %s1017_s20, %s1403_s20  }
  0x11   : > { %s603_s6 = sadd.s32 4294967294, %s975_s29   ;;  %s38_s7 = sadd.s32 1, %s967_s27 }
  0x12   : > { %s41_s8 = sadd.s32 1, %s971_s28  ;;  %p39_p0 = scmp.ge.s32.totalorder %s38_s7, 4 }
  0x13   : > { %s71_s9 = sadd.s32 1, %s955_s25  ;;  %p78_p1 = scmp.ne.s32.totalorder %s955_s25, %s951_s24 }
  0x14   : > { %p79_p2 = scmp.eq.s32.totalorder %s975_s29, 0  ;;  %s1413_s7 = smov (%p39_p0, %s38_s7), 0 }
  0x15   : > { %1377 = sst [smem:[#allocation17_spill]] %s1413_s7  ;;  %s1415_s8 = smov (!%p39_p0, %s41_s8), %s971_s28 }
  0x16   : > { %s66_s10 = ssub.s32 %s967_s27, %s1413_s7  ;;  %p1085_p3 = por %p79_p2, %p78_p1 }
  0x17   : > { %p43_p4 = scmp.ge.s32.totalorder %s1415_s8, 2  ;;  %p84_p5 = scmp.ne.s32.totalorder %s951_s24, %s947_s23 }
  0x18   : > { %p1090_p6 = scmp.eq.s32.totalorder %s602_s30, 0  ;;  %s97_s13 = sadd.s32 1, %s943_s22 }
  0x19   : > { %s1417_s8 = smov (%p43_p4, %s1415_s8), 0  ;;  %p104_p8 = scmp.ne.s32.totalorder %s943_s22, %s939_s21 }
  0x1a   : > { %1380 = sst [smem:[#allocation18_spill]] %s1417_s8  ;;  %p1099_p7 = por %p1090_p6, %p84_p5 }
  0x1b   : > { %s67_s15 = ssub.s32 %s971_s28, %s1417_s8  ;;  %p110_p9 = scmp.ne.s32.totalorder %s939_s21, %s935_s20 }
  0x1c   : > { %s1381_s14 = scalar_select %p1099_p7, 1, 0 }
  0x1d   : > { %s68_s16 = sor.u32 %s67_s15, %s66_s10  ;;  %p95_p10 = scmp.eq.s32.totalorder %s67_s15, 0 }
  0x1e   : > { %p69_p11 = scmp.eq.s32.totalorder %s68_s16, 0  ;;  %p1111_p12 = por %p104_p8, %p79_p2 }
  0x1f   : > { %s1116_s18 = scalar_select %p95_p10, %s943_s22, %s97_s13  }
  0x20   : > { %s1119_s19 = scalar_select %p69_p11, %s955_s25, %s71_s9  }
  0x21   : > { %1383 = sst [smem:[#allocation19_spill]] %s1116_s18  ;;  %p1123_p13 = por %p110_p9, %p1090_p6 }
  0x22   : > { %1384 = sst [smem:[#allocation20_spill]] %s1119_s19  ;;  %p155_p0 = scmp.eq.s32.totalorder %s602_s30, 7 }
  0x23   : > { %s1385_s23 = scalar_select %p1123_p13, 1, 0 }
  0x24   : > { %p161_p1 = scmp.eq.s32.totalorder %s603_s6, 7  ;;  %p1127_p4 = por %p155_p0, %p104_p8 }
  0x25   : > { %p652_p2 = scmp.lt.s32.totalorder %s975_s29, 8  ;;  %s213_s9 = sand.u32 1, %s955_s25  }
  0x26   : > { %s1386_s10 = scalar_select %p1127_p4, 1, 0 }
  0x27   : > { %p1132_p5 = por %p161_p1, %p110_p9  ;;  %s606_s12 = sshll.u32 %s213_s9, 3 }
  0x28   : > { %s607_s15 = sshll.u32 %s967_s27, 1  ;;  %s217_s8 = scalar_lea.vmem [#allocation4], %s606_s12 }
  0x29   : > { %s1387_s13 = scalar_select %p1132_p5, 1, 0 }
  0x2a   : > { %s222_s16 = sadd.s32 %s971_s28, %s607_s15  ;;  %s226_s7 = sshll.u32 %s217_s8, 4  ;;  %s1139_s7 = int_to_ptr.vmem [resolvable:$true] %s226_s7 }
  0x2b   : > { %s608_s19 = sshll.u32 %s222_s16, 7  ;;  %s1388_s1 = sld [smem:[#allocation21_spill]] }
  0x2c   : > { %p1148_p6 = pnand %p652_p2, %p1085_p3  ;;  %p1154_p8 = pnand %p652_p2, %p1111_p12 }
  0x2e   : > { %p759_p0 = pneg %p1148_p6 }
  0x31   : > { %s1144_s18 = scalar_lea.hbm %s1388_s1, %s608_s19  ;;  %s214_s19 = scalar_lea.sflag [#allocation5], %s213_s9 }
  0x32   : > { %s757_s12 = scalar_lea.hbm %s1144_s18, 128  ;;  %s762_s17 = scalar_lea.hbm %s1388_s1, 1024 }
  0x33   : > { %p758_p11 = scmp.ne.s32.totalorder %s1144_s18, %s757_s12  ;;  %p763_p12 = scmp.lt.u32.totalorder %s1144_s18, %s1388_s1 }
  0x34   : > { %p764_p2 = scmp.lt.u32.totalorder %s762_s17, %s757_s12  ;;  %p766_p10 = scmp.lt.u32.totalorder %s757_s12, %s1144_s18 }
  0x35   : > { %p760_p3 = pnand %p759_p0, %p758_p11 }
  0x36   : > { %p765_p9 = por %p764_p2, %p763_p12 }
  0x37   : > { %p761_p1 = pneg %p760_p3 }
  0x38   : > { %p767_p5 = por %p766_p10, %p765_p9 }
  0x3a   : > { %p768_p4 = pnand %p767_p5, %p761_p1 }
  0x3c   : > { %771 = shalt.err (!%p768_p4)
}
  0x3d   : > { %s772_s9 = scalar_lea.vmem %s1139_s7, 128  ;;  %s977_s6 = smov [#allocation4]  }
  0x3e   : > { %p773_p11 = scmp.ne.s32.totalorder %s1139_s7, %s772_s9  ;;  %s777_s11 = sshll.u32 %s977_s6, 4  ;;  %s778_s11 = int_to_ptr.vmem [resolvable:$false] %s777_s11 }
  0x3f   : > { %s779_s15 = scalar_lea.vmem %s778_s11, 256  ;;  %p780_p7 = scmp.lt.s32.totalorder %s1139_s7, %s778_s11 }
  0x40   : > { %p775_p3 = pnand %p773_p11, %p759_p0  ;;  %p781_p12 = scmp.lt.s32.totalorder %s779_s15, %s772_s9 }
  0x42   : > { %p776_p13 = pneg %p775_p3  ;;  %p782_p2 = por %p781_p12, %p780_p7 }
  0x44   : > { %p783_p9 = pnand %p782_p2, %p776_p13 }
  0x46   : > { %786 = shalt.err (!%p783_p9)
}
  0x47   : > { %641 = dma.hbm_to_vmem [thread:$0]  (!%p1148_p6), %s1144_s18, 128, %s1139_s7, %s214_s19  }
  0x48   : > { %p1391_p4 = scmp.lt.s32.totalorder %s975_s29, 9  ;;  %p1392_p5 = scmp.ge.s32.totalorder %s975_s29, 1 }
  0x49   : > { %s233_s17 = sand.u32 1, %s943_s22   ;;  %s610_s16 = sshll.u32 %s971_s28, 7 }
  0x4a   : > { %p1189_p10 = pnand %p1392_p5, %p1391_p4  ;;  %s609_s30 = sshll.u32 %s233_s17, 4 }
  0x4b   : > { %s1198_s6 = scalar_lea.hbm %s1365_s2, %s610_s16  ;;  %s237_s11 = scalar_lea.vmem [#allocation7], %s609_s30 }
  0x4c   : > { %s243_s7 = sshll.u32 %s237_s11, 4  ;;  %s1202_s18 = scalar_lea.sflag [#allocation8], %s233_s17  ;;  %s1200_s7 = int_to_ptr.vmem [resolvable:$true] %s243_s7 }
  0x4d   : > { %s787_s19 = scalar_lea.hbm %s1198_s6, 256  ;;  %p789_p13 = pneg %p1154_p8 }
  0x4e   : > { %p788_p7 = scmp.ne.s32.totalorder %s1198_s6, %s787_s19  ;;  %s792_s9 = scalar_lea.hbm %s1365_s2, 512 }
  0x4f   : > { %p793_p1 = scmp.lt.u32.totalorder %s1198_s6, %s1365_s2  ;;  %p794_p11 = scmp.lt.u32.totalorder %s792_s9, %s787_s19 }
  0x50   : > { %p790_p6 = pnand %p789_p13, %p788_p7  ;;  %p796_p12 = scmp.lt.u32.totalorder %s787_s19, %s1198_s6 }
  0x51   : > { %p795_p3 = por %p794_p11, %p793_p1 }
  0x52   : > { %p791_p0 = pneg %p790_p6 }
  0x53   : > { %p797_p2 = por %p796_p12, %p795_p3 }
  0x55   : > { %p798_p9 = pnand %p797_p2, %p791_p0 }
  0x57   : > { %801 = shalt.err (!%p798_p9)
}
  0x58   : > { %s802_s17 = scalar_lea.vmem %s1200_s7, 256  ;;  %s978_s30 = smov [#allocation7]  }
  0x59   : > { %p803_p4 = scmp.ne.s32.totalorder %s1200_s7, %s802_s17  ;;  %s807_s11 = sshll.u32 %s978_s30, 4  ;;  %s808_s11 = int_to_ptr.vmem [resolvable:$false] %s807_s11 }
  0x5a   : > { %s809_s1 = scalar_lea.vmem %s808_s11, 512  ;;  %p810_p6 = scmp.lt.s32.totalorder %s1200_s7, %s808_s11 }
  0x5b   : > { %p805_p5 = pnand %p803_p4, %p789_p13  ;;  %p811_p1 = scmp.lt.s32.totalorder %s809_s1, %s802_s17 }
  0x5d   : > { %p806_p7 = pneg %p805_p5  ;;  %p812_p11 = por %p811_p1, %p810_p6 }
  0x5f   : > { %p813_p3 = pnand %p812_p11, %p806_p7 }
  0x61   : > { %816 = shalt.err (!%p813_p3)
}
  0x62   : > { %s979_s19 = smov 256   ;;  %s980_s15 = smov 128  }
  0x63   : > { %s981_s16 = smov 8   ;;  %255 = sbr.rel (%p1189_p10) target bundleno = 1872 (0x750), region = 36 }
  0x64   : > { %644 = dma.hbm_to_vmem [thread:$0]  (!%p1154_p8), %s1198_s6, 256, %s1200_s7, %s1202_s18, %s979_s19, %s980_s15, %s981_s16  }
  0x65   : > { %s257_s9 = sand.u32 (!%p1189_p10), 1, %s951_s24   ;;  %p1394_p13 = scmp.ne.s32.totalorder (!%p1189_p10), %s1381_s14, 0 }
  0x66   : > { %s1233_s25 = sshll.u32 (!%p1189_p10), %s257_s9, 3  ;;  %s258_s17 = scalar_lea.sflag (!%p1189_p10), [#allocation5], %s257_s9 }
  0x67   : > { %s261_s30 = scalar_lea.vmem (!%p1189_p10), [#allocation4], %s1233_s25 }
  0x6a   : > { %918 = dma.done.wait (%p1394_p13), %s258_s17, 128  }
  0x6b   : > { %920 = vsyncadd (%p1394_p13), %s258_s17, 4294967168  ;;  %s1241_s8 = sand.u32 1, %s939_s21   ;;  %p1395_p8 = scmp.ne.s32.totalorder %s1385_s23, 0 }
  0x6c   : > { %s613_s12 = sshll.u32 %s1241_s8, 4  ;;  %s267_s6 = scalar_lea.sflag [#allocation8], %s1241_s8 }
  0x6d   : > { %s270_s7 = scalar_lea.vmem [#allocation7], %s613_s12 }
  0x6e   : > { %922 = dma.done.wait (%p1395_p8), %s267_s6, 256  }
  0x6f   : > { %924 = vsyncadd (%p1395_p8), %s267_s6, 4294967040  ;;  %s298_s18 = scalar_lea.vmem [#allocation9], %s1241_s8  ;;  %s1251_s11 = scalar_lea.vmem [#allocation10], %s1241_s8 }
  0x70   : > { %p614_p10 = scmp.ne.s32.totalorder %s959_s0, 0 }
  0x71   : > { %v616_v0 = vld [vmem:[%s1366_s3] ss:$0 sm:$0xff] (!%p614_p10)  ;;  %s310_s19 = sld [smem:[#allocation3]] (!%p614_p10)  ;;  %v615_v2 = vld [vmem:[%s270_s7 + $0x8] sm:$0xff] (!%p614_p10) }
  0x72   : > { %308 = sbr.rel (%p614_p10) target bundleno = 439 (0x1b7), region = 48  ;;  %v311_v1 = vld [vmem:[%s270_s7] sm:$0xff] (!%p614_p10)  ;;  %v352_v4 = vrot.slane (!%p614_p10), %v615_v2, 4  ;;  %v333_v9 = vsub.f32 (!%p614_p10), %v615_v2, %v616_v0 }
  0x73   : > { %v346_v3 = vrot.slane (!%p614_p10), %v311_v1, 4  ;;  %v320_v5 = vsub.f32 (!%p614_p10), %v311_v1, %v616_v0 }
  0x74   : > { %v353_v7 = vadd.f32 (!%p614_p10), %v615_v2, %v352_v4 }
  0x75   : > { %v347_v6 = vadd.f32 (!%p614_p10), %v346_v3, %v311_v1 }
  0x76   : > { %v354_v10 = vrot.slane (!%p614_p10), %v353_v7, 2 }
  0x77   : > { %v348_v8 = vrot.slane (!%p614_p10), %v347_v6, 2  ;;  %v321_v11 = vstv (!%p614_p10), %s310_s19 }
  0x78   : > { %v322_v12 = vmul.f32 (!%p614_p10), %v321_v11, %v320_v5  ;;  %v355_v14 = vadd.f32 (!%p614_p10), %v354_v10, %v353_v7  ;;  %v334_v16 = vmul.f32 (!%p614_p10), %v333_v9, %v321_v11 }
  0x79   : > { %v349_v13 = vadd.f32 %v348_v8, %v347_v6 }
  0x7a   : > { %323 = vmax.xlane.f32.xlu0 %v322_v12  ;;  %v356_v17 = vrot.slane %v355_v14, 1 }
  0x7b   : > { %v350_v15 = vrot.slane %v349_v13, 1 }
  0x7c   : > { %v357_v19 = vadd.f32 %v356_v17, %v355_v14 }
  0x7d   : > { %v351_v18 = vadd.f32 %v350_v15, %v349_v13 }
  0x7e   : > { %335 = vmax.xlane.f32.xlu0 %v334_v16 }
  0x7f   : > { %v358_v20 = vadd.f32 %v357_v19, %v351_v18 }
  0x81   : > { %359 = vst [vmem:[%s298_s18] sm:$0x1] %v358_v20 }
 0x107   : > { %v324_v21 = vpop.xlane.xlu0 %323 }
 0x108   : > { %v325_v22 = vsub.f32 %v322_v12, %v324_v21 }
 0x10a   : > { %v326_v23 = vmul.f32 1.442695, %v325_v22 }
 0x10b   : > { %v336_v24 = vpop.xlane.xlu0 %335 }
 0x10c   : > { %745 = vpow2.f32 %v326_v23  ;;  %v337_v25 = vsub.f32 %v334_v16, %v336_v24 }
 0x10e   : > { %v338_v26 = vmul.f32 1.442695, %v337_v25 }
 0x110   : > { %747 = vpow2.f32 %v338_v26 }
 0x116   : > { %v746_v27 = vpop.eup %745 }
 0x117   : > { %328 = vadd.xlane.f32.xlu1 %v746_v27 }
 0x11a   : > { %v748_v28 = vpop.eup %747 }
 0x11b   : > { %340 = vadd.xlane.f32.xlu1 %v748_v28 }
 0x1a4   : > { %v329_v29 = vpop.xlane.xlu1 %328 }
 0x1a5   : > { %749 = vrcp.f32 %v329_v29 }
 0x1a8   : > { %v341_v30 = vpop.xlane.xlu1 %340 }
 0x1a9   : > { %751 = vrcp.f32 %v341_v30 }
 0x1af   : > { %v750_v31 = vpop.eup %749 }
 0x1b0   : > { %v331_v32 = vmul.f32 %v750_v31, %v746_v27 }
 0x1b2   : > { %332 = vst [vmem:[#allocation2] sm:$0xff] %v331_v32 }
 0x1b3   : > { %v752_v33 = vpop.eup %751 }
 0x1b4   : > { %v343_v34 = vmul.f32 %v752_v33, %v748_v28 }
 0x1b6   : > { %345 = vst [vmem:[#allocation2 + $0x8] sm:$0xff] %v343_v34 }
 0x1b7 PF: > { %v360_v35 = vld [vmem:[%s261_s30] sm:$0xff]  ;;  %vm381_vm0 = vcmask (!%p614_p10), 7168  }
 0x1b8   : > { %v361_v36 = vmul.f32 10.0, %v360_v35 }
 0x1b9   : > { %v372_v41 = vld [vmem:[#allocation2] sm:$0xff] }
 0x1ba   : > { %362 = vmax.xlane.f32.xlu0 %v361_v36 }
 0x1bd   : > { %v374_v42 = vld [vmem:[#allocation2 + $0x8] sm:$0xff] }
 0x247   : > { %v363_v37 = vpop.xlane.xlu0 %362 }
 0x248   : > { %v364_v38 = vsub.f32 %v361_v36, %v363_v37 }
 0x24a   : > { %v365_v39 = vmul.f32 1.442695, %v364_v38 }
 0x24c   : > { %753 = vpow2.f32 %v365_v39 }
 0x256   : > { %v754_v40 = vpop.eup %753 }
 0x257   : > { %367 = vadd.xlane.f32.xlu0 %v754_v40 }
 0x2e4   : > { %v368_v43 = vpop.xlane.xlu0 %367 }
 0x2e5   : > { %755 = vlog2.f32 %v368_v43 }
 0x2ec   : > { %377 = sbr.rel (%p614_p10) target bundleno = 1109 (0x455), region = 52 }
 0x2ef   : > { %v756_v44 = vpop.eup %755 }
 0x2f0   : > { %v370_v45 = vmul.f32 0.6931472, %v756_v44 }
 0x2f2   : > { %v371_v46 = vsub.f32 %v364_v38, %v370_v45 }
 0x2f4   : > { %v378_v47 = vmul.f32 %v374_v42, %v371_v46 }
 0x2f6   : > { %379 = vadd.xlane.f32.xlu0 %v378_v47 }
 0x383   : > { %v380_v48 = vpop.xlane.xlu0 %379 }
 0x384   : > { %v382_v49 = vsel %vm381_vm0, %v380_v48, 0.0 }
 0x385   : > { %383 = vadd.xlane.f32.xlu0 %v382_v49 }
 0x412   : > { %v384_v50 = vpop.xlane.xlu0 %383 }
 0x413   : > { %v385_v51 = vrot.slane %v384_v50, 4 }
 0x415   : > { %v386_v52 = vadd.f32 %v385_v51, %v384_v50 }
 0x417   : > { %v387_v53 = vrot.slane %v386_v52, 2 }
 0x419   : > { %v388_v54 = vadd.f32 %v387_v53, %v386_v52 }
 0x41b   : > { %v389_v55 = vrot.slane %v388_v54, 1 }
 0x41d   : > { %v390_v56 = vadd.f32 %v389_v55, %v388_v54 }
 0x41f   : > { %624 = vpush %v390_v56 }
 0x450   : > { %s625_s23 = spop %624 }
 0x451   : > { %s392_s15 = ssub.f32 0.0, %s625_s23 }
 0x453   : > { %v393_v57 = vstv %s392_s15 }
 0x454   : > { %394 = vst [vmem:[%s1251_s11] sm:$0x1] %v393_v57 }
 0x455 PF: > { %p618_p0 = scmp.ne.s32.totalorder %s959_s0, 1 }
 0x456   : > { %v400_v58 = vmul.f32 (!%p618_p0), %v372_v41, %v371_v46  ;;  %vm403_vm1 = vcmask (!%p618_p0), 7168  }
 0x457   : > { %398 = sbr.rel (%p618_p0) target bundleno = 1465 (0x5b9), region = 56 }
 0x458   : > { %401 = vadd.xlane.f32.xlu0 (!%p618_p0), %v400_v58 }
 0x45b   : > { %v399_v4 = vld [vmem:[%s1251_s11] sm:$0x1] (!%p618_p0) }
 0x4e5   : > { %v402_v59 = vpop.xlane.xlu0 %401 }
 0x4e6   : > { %v404_v60 = vsel %vm403_vm1, %v402_v59, 0.0 }
 0x4e7   : > { %405 = vadd.xlane.f32.xlu0 %v404_v60 }
 0x574   : > { %v406_v61 = vpop.xlane.xlu0 %405 }
 0x575   : > { %v407_v62 = vrot.slane %v406_v61, 4 }
 0x577   : > { %v408_v63 = vadd.f32 %v407_v62, %v406_v61 }
 0x579   : > { %v409_v0 = vrot.slane %v408_v63, 2 }
 0x57b   : > { %v410_v1 = vadd.f32 %v409_v0, %v408_v63 }
 0x57d   : > { %v411_v2 = vrot.slane %v410_v1, 1 }
 0x57f   : > { %v412_v3 = vadd.f32 %v411_v2, %v410_v1 }
 0x581   : > { %626 = vpush %v412_v3 }
 0x5b2   : > { %s627_s16 = spop %626 }
 0x5b3   : > { %s414_s9 = ssub.f32 0.0, %s627_s16 }
 0x5b5   : > { %v415_v5 = vstv %s414_s9 }
 0x5b6   : > { %v416_v6 = vadd.f32 %v415_v5, %v399_v4 }
 0x5b8   : > { %417 = vst [vmem:[%s1251_s11] sm:$0x1] %v416_v6 }
 0x5b9 PF: > { %p619_p12 = scmp.lt.s32.totalorder %s959_s0, 2 }
 0x5ba   : > { %v423_v7 = vadd.f32 (!%p619_p12), %v374_v42, %v372_v41  ;;  %vm427_vm2 = vcmask (!%p619_p12), 7168  }
 0x5bb   : > { %421 = sbr.rel (%p619_p12) target bundleno = 1823 (0x71f), region = 60 }
 0x5bc   : > { %v424_v8 = vmul.f32 (!%p619_p12), %v423_v7, %v371_v46 }
 0x5be   : > { %425 = vadd.xlane.f32.xlu0 (!%p619_p12), %v424_v8 }
 0x5bf   : > { %v422_v18 = vld [vmem:[%s1251_s11] sm:$0x1] (!%p619_p12) }
 0x64b   : > { %v426_v9 = vpop.xlane.xlu0 %425 }
 0x64c   : > { %v428_v10 = vsel %vm427_vm2, %v426_v9, 0.0 }
 0x64d   : > { %429 = vadd.xlane.f32.xlu0 %v428_v10 }
 0x6da   : > { %v430_v11 = vpop.xlane.xlu0 %429 }
 0x6db   : > { %v431_v12 = vrot.slane %v430_v11, 4 }
 0x6dd   : > { %v432_v13 = vadd.f32 %v431_v12, %v430_v11 }
 0x6df   : > { %v433_v14 = vrot.slane %v432_v13, 2 }
 0x6e1   : > { %v434_v15 = vadd.f32 %v433_v14, %v432_v13 }
 0x6e3   : > { %v435_v16 = vrot.slane %v434_v15, 1 }
 0x6e5   : > { %v436_v17 = vadd.f32 %v435_v16, %v434_v15 }
 0x6e7   : > { %628 = vpush %v436_v17 }
 0x718   : > { %s629_s25 = spop %628 }
 0x719   : > { %s438_s0 = ssub.f32 0.0, %s629_s25 }
 0x71b   : > { %v439_v19 = vstv %s438_s0 }
 0x71c   : > { %v440_v20 = vadd.f32 %v439_v19, %v422_v18 }
 0x71e   : > { %441 = vst [vmem:[%s1251_s11] sm:$0x1] %v440_v20 }
 0x71f PF: > { %s620_s17 = sshll.u32 %s963_s26, 4  ;;  %s459_s7 = sshll.u32 %s298_s18, 4  ;;  %s460_s7 = int_to_ptr.vmem [resolvable:$true] %s459_s7 }
 0x720   : > { %s1278_s6 = scalar_lea.hbm %s1367_s4, %s620_s17  ;;  %s443_s14 = scalar_lea.sflag [#allocation6], %s1241_s8 }
 0x721   : > { %s817_s1 = scalar_lea.vmem %s460_s7, 16  ;;  %p1396_p9 = scmp.ne.s32.totalorder %s1386_s10, 0 }
 0x722   : > { %p818_p2 = scmp.ne.s32.totalorder %s460_s7, %s817_s1  ;;  %s982_s19 = smov [#allocation9]  }
 0x723   : > { %s821_s23 = sshll.u32 %s982_s19, 4  ;;  %s822_s23 = int_to_ptr.vmem [resolvable:$false] %s821_s23 }
 0x724   : > { %p819_p4 = pnand %p818_p2, %p1396_p9  ;;  %s823_s15 = scalar_lea.vmem %s822_s23, 32 }
 0x725   : > { %p824_p7 = scmp.lt.s32.totalorder %s460_s7, %s822_s23  ;;  %p825_p6 = scmp.lt.s32.totalorder %s823_s15, %s817_s1 }
 0x726   : > { %p820_p5 = pneg %p819_p4 }
 0x727   : > { %p826_p1 = por %p825_p6, %p824_p7 }
 0x729   : > { %p827_p11 = pnand %p826_p1, %p820_p5 }
 0x72b   : > { %830 = shalt.err (!%p827_p11)
}
 0x72c   : > { %s831_s18 = scalar_lea.hbm %s1278_s6, 16  ;;  %s835_s25 = scalar_lea.hbm %s1367_s4, 32 }
 0x72d   : > { %p832_p3 = scmp.ne.s32.totalorder %s1278_s6, %s831_s18  ;;  %p836_p10 = scmp.lt.u32.totalorder %s1278_s6, %s1367_s4 }
 0x72e   : > { %p837_p0 = scmp.lt.u32.totalorder %s835_s25, %s831_s18  ;;  %p839_p2 = scmp.lt.u32.totalorder %s831_s18, %s1278_s6 }
 0x72f   : > { %p833_p13 = pnand %p832_p3, %p1396_p9 }
 0x730   : > { %p838_p12 = por %p837_p0, %p836_p10 }
 0x731   : > { %p834_p8 = pneg %p833_p13 }
 0x732   : > { %p840_p4 = por %p839_p2, %p838_p12 }
 0x734   : > { %p841_p5 = pnand %p840_p4, %p834_p8 }
 0x736   : > { %844 = shalt.err (!%p841_p5)
}
 0x737   : > { %634 = dma.vmem_to_hbm [thread:$0]  (%p1396_p9), %s460_s7, 16, %s1278_s6, %s443_s14  }
 0x738   : > { %s1305_s19 = scalar_lea.hbm %s1368_s5, %s620_s17  ;;  %s472_s23 = sshll.u32 %s1251_s11, 4  ;;  %s473_s23 = int_to_ptr.vmem [resolvable:$true] %s472_s23 }
 0x739   : > { %s447_s15 = scalar_lea.sflag [#allocation11], %s1241_s8  ;;  %s845_s18 = scalar_lea.vmem %s473_s23, 16 }
 0x73a   : > { %p846_p7 = scmp.ne.s32.totalorder %s473_s23, %s845_s18  ;;  %s983_s16 = smov [#allocation10]  }
 0x73b   : > { %s849_s9 = sshll.u32 %s983_s16, 4  ;;  %s850_s9 = int_to_ptr.vmem [resolvable:$false] %s849_s9 }
 0x73c   : > { %p847_p6 = pnand %p846_p7, %p1396_p9  ;;  %s851_s25 = scalar_lea.vmem %s850_s9, 32 }
 0x73d   : > { %p852_p11 = scmp.lt.s32.totalorder %s473_s23, %s850_s9  ;;  %p853_p3 = scmp.lt.s32.totalorder %s851_s25, %s845_s18 }
 0x73e   : > { %p848_p1 = pneg %p847_p6 }
 0x73f   : > { %p854_p13 = por %p853_p3, %p852_p11 }
 0x741   : > { %p855_p8 = pnand %p854_p13, %p848_p1 }
 0x743   : > { %858 = shalt.err (!%p855_p8)
}
 0x744   : > { %s859_s26 = scalar_lea.hbm %s1305_s19, 16  ;;  %s863_s17 = scalar_lea.hbm %s1368_s5, 32 }
 0x745   : > { %p860_p10 = scmp.ne.s32.totalorder %s1305_s19, %s859_s26  ;;  %p864_p2 = scmp.lt.u32.totalorder %s1305_s19, %s1368_s5 }
 0x746   : > { %p865_p4 = scmp.lt.u32.totalorder %s863_s17, %s859_s26  ;;  %p867_p7 = scmp.lt.u32.totalorder %s859_s26, %s1305_s19 }
 0x747   : > { %p861_p0 = pnand %p860_p10, %p1396_p9 }
 0x748   : > { %p866_p5 = por %p865_p4, %p864_p2 }
 0x749   : > { %p862_p12 = pneg %p861_p0 }
 0x74a   : > { %p868_p6 = por %p867_p7, %p866_p5 }
 0x74c   : > { %p869_p1 = pnand %p868_p6, %p862_p12 }
 0x74e   : > { %872 = shalt.err (!%p869_p1)
}
 0x74f   : > { %635 = dma.vmem_to_hbm [thread:$0]  (%p1396_p9), %s473_s23, 16, %s1305_s19, %s447_s15  }
 0x750 PF: > { %p653_p11 = scmp.ge.s32.totalorder %s975_s29, 2  ;;  %s484_s14 = sand.u32 1, %s935_s20  }
 0x751   : > { %p1397_p3 = scmp.ne.s32.totalorder %s1387_s13, 0  ;;  %s485_s0 = scalar_lea.sflag [#allocation6], %s484_s14 }
 0x753   : > { %p646_p13 = pnand %p653_p11, %p1397_p3 }
 0x755   : > { %926 = dma.done.wait (!%p646_p13), %s485_s0, 16  }
 0x756   : > { %928 = vsyncadd (!%p646_p13), %s485_s0, 4294967280  ;;  %s493_s30 = scalar_lea.sflag [#allocation11], %s484_s14 }
 0x757   : > { %930 = dma.done.wait (!%p646_p13), %s493_s30, 16  }
 0x758   : > { %932 = vsyncadd (!%p646_p13), %s493_s30, 4294967280  ;;  %s29_s29 = sadd.s32 1, %s975_s29   ;;  %s1398_s10 = sld [smem:[#allocation19_spill]] }
 0x759   : > { %p26_p8 = scmp.ge.s32.totalorder %s29_s29, 10   ;;  %s1399_s12 = sld [smem:[#allocation16_spill]] }
 0x75a   : > { %s1400_s25 = sld [smem:[#allocation20_spill]]  ;;  %s1401_s1 = sld [smem:[#allocation17_spill]] }
 0x75b   : > { %s1402_s13 = sld [smem:[#allocation18_spill]]  ;;  %s1403_s20 = smov %s939_s21 }
 0x75c   : > { %s1404_s21 = smov %s943_s22  ;;  %s1406_s23 = smov %s951_s24 }
 0x75d   : > { %s1408_s0 = smov %s967_s27  ;;  %s1409_s26 = smov %s971_s28 }
 0x75e   : > { %s1405_s22 = smov %s1398_s10  ;;  %28 = sbr.rel (!%p26_p8) target bundleno = 16 (0x10), region = 130 }
 0x75f   : > { %s1407_s24 = smov %s1399_s12 }
 0x760   : > { %s1410_s27 = smov %s1401_s1 }
 0x761   : > { %s1411_s28 = smov %s1402_s13 }
 0x765   :  { %497 = vsyncpa [#allocation5], 1 }
 0x766   :  { %499 = vsyncpa [#allocation5 + $0x1], 1 }
 0x767   :  { %500 = vsyncpa [#allocation8], 1 }
 0x768   :  { %502 = vsyncpa [#allocation8 + $0x1], 1 }
 0x769   :  { %503 = vsyncpa [#allocation6], 1 }
 0x76a   :  { %505 = vsyncpa [#allocation6 + $0x1], 1 }
 0x76b   :  { %506 = vsyncpa [#allocation11], 1 }
 0x76c   :  { %508 = vsyncpa [#allocation11 + $0x1], 1 }

</bundles_post_ra>
